<compile_context>
chip_gen: v6e
topology: v6e:2x2x1
jax: 0.10.0
libtpu: 0.0.40
codegen_flags: <defaults>
</compile_context>

<pallas_src>
import math

import jax
import jax.numpy as jnp
from jax.experimental import pallas as pl
from jax.experimental.pallas import tpu as pltpu

# ---------------- problem sizes (small, consistent with the module) ----------
B = 2                       # batch (wrapper supports any B; big B amortizes cost)
C, HIMG, WIMG = 4, 16, 16   # image NCHW
IMG_FLAT = C * HIMG * WIMG  # 1024
STATE_DIM = 10
STATE_PAD = 16              # state zero-padded to a bf16 sublane tile
ACTION_DIM = 7
FEATURE_DIM = 48            # backbone.feature_dim (padded to HID in packing)
VIS_DIM = 32                # visual_feature_dim
HID = 64                    # mlp_dims = [64, 64, 64, 64]
STD_MIN, STD_MAX = 0.01, 1.0
LOGVAR_MIN = math.log(STD_MIN ** 2)
LOGVAR_MAX = math.log(STD_MAX ** 2)
LN_EPS = 1e-5

XCOLS = IMG_FLAT + STATE_PAD   # packed activation slab width
NHEAD = 2 * ACTION_DIM         # fused [mean | logvar] head width

# 128-lane-aligned slots inside the packed weight / bias buffers
W_SLOT = 128
WC_OFF, W0_OFF, W1_OFF, W2_OFF, W3_OFF, WH_OFF = [k * W_SLOT for k in range(6)]
WPACK_COLS = 6 * W_SLOT
(BB_OFF, BC_OFF, LNG_OFF, LNB_OFF, B0_OFF,
 B1_OFF, B2_OFF, B3_OFF, BH_OFF) = [k * W_SLOT for k in range(9)]
BPACK_COLS = 9 * W_SLOT

# TODO(synk): per the review, an int8 (v5e/v6e) or fp8 (v7x) path for wb would
# cut the dominant DMA 4x; not implemented here to keep one portable dtype.


def _mish(x):
    # mish(x) = x * tanh(softplus(x)); tanh(softplus(x)) == (t^2-1)/(t^2+1), t=1+e^x.
    # => 1 exp + 1 reciprocal instead of exp + log1p + tanh (3 EUP passes).
    # (pl.reciprocal(..., approx=True) would shave the divide's Newton step too,
    #  at ~bf16-level accuracy; kept exact here to hold tight validation tolerance.)
    e = jnp.exp(jnp.minimum(x, 20.0))
    t2 = (1.0 + e) * (1.0 + e)
    ts = jnp.where(x > 20.0, 1.0, (t2 - 1.0) / (t2 + 1.0))
    return x * ts


def actor_kernel(x_ref, wb_ref, wp_ref, bp_ref, o_ref):
    f32, bf16 = jnp.float32, jnp.bfloat16

    # -- static views into the packed bias buffer (f32, 128-lane aligned slots) --
    bb  = bp_ref[:, BB_OFF:BB_OFF + HID]          # backbone bias (48 real + 16 zero)
    bc  = bp_ref[:, BC_OFF:BC_OFF + VIS_DIM]      # compress bias
    lng = bp_ref[:, LNG_OFF:LNG_OFF + VIS_DIM]    # LayerNorm gamma
    lnb = bp_ref[:, LNB_OFF:LNB_OFF + VIS_DIM]    # LayerNorm beta
    b0  = bp_ref[:, B0_OFF:B0_OFF + HID]
    b1  = bp_ref[:, B1_OFF:B1_OFF + HID]
    b2  = bp_ref[:, B2_OFF:B2_OFF + HID]
    b3  = bp_ref[:, B3_OFF:B3_OFF + HID]
    bh  = bp_ref[:, BH_OFF:BH_OFF + NHEAD]        # [bm | bl]

    # -- static views into the packed small-weight buffer (bf16) --
    wc  = wp_ref[:, WC_OFF:WC_OFF + VIS_DIM]                         # (64,32), rows 48:64 = 0
    w0s = wp_ref[0:STATE_PAD, W0_OFF:W0_OFF + HID]                   # (16,64), rows 10:16 = 0
    w0v = wp_ref[STATE_PAD:STATE_PAD + VIS_DIM, W0_OFF:W0_OFF + HID] # (32,64)
    w1  = wp_ref[:, W1_OFF:W1_OFF + HID]
    w2  = wp_ref[:, W2_OFF:W2_OFF + HID]
    w3  = wp_ref[:, W3_OFF:W3_OFF + HID]
    wh  = wp_ref[:, WH_OFF:WH_OFF + NHEAD]                           # (64,14) = [wm | wl]

    img = x_ref[:, 0:IMG_FLAT]                       # (TB, 1024) bf16
    st  = x_ref[:, IMG_FLAT:IMG_FLAT + STATE_PAD]    # (TB, 16) bf16, cols 10:16 = 0

    # ---- backbone: flatten -> Linear -> ReLU (the only large MXU op, K=1024) ----
    feat = jnp.dot(img, wb_ref[...], preferred_element_type=f32) + bb
    feat = jnp.maximum(feat, 0.0)                    # (TB, 64); cols 48:64 == 0

    # ---- compress: Linear -> LayerNorm -> Dropout(0) -> ReLU ----
    z = jnp.dot(feat.astype(bf16), wc, preferred_element_type=f32) + bc
    s1 = jnp.sum(z, axis=-1, keepdims=True)          # independent reductions:
    s2 = jnp.sum(z * z, axis=-1, keepdims=True)      # both XLU reduces can overlap
    mu = s1 * (1.0 / VIS_DIM)
    var = s2 * (1.0 / VIS_DIM) - mu * mu             # biased variance, E[z^2]-mu^2
    z = (z - mu) * jax.lax.rsqrt(var + LN_EPS) * lng + lnb
    img_feat = jnp.maximum(z, 0.0)

    # ---- mlp_base (ResidualMLP); cat(state, img_feat) @ W0 == split matmul ----
    x = (jnp.dot(st, w0s, preferred_element_type=f32)
         + jnp.dot(img_feat.astype(bf16), w0v, preferred_element_type=f32)
         + b0)
    h = jnp.dot(_mish(x).astype(bf16), w1, preferred_element_type=f32) + b1
    h = jnp.dot(_mish(h).astype(bf16), w2, preferred_element_type=f32) + b2
    x = x + h
    x = _mish(jnp.dot(x.astype(bf16), w3, preferred_element_type=f32) + b3)

    # ---- fused heads: one matmul + one tanh for [mean | logvar] ----
    head = jnp.tanh(jnp.dot(x.astype(bf16), wh, preferred_element_type=f32) + bh)
    lv = LOGVAR_MIN + 0.5 * (LOGVAR_MAX - LOGVAR_MIN) * (head + 1.0)
    col = jax.lax.broadcasted_iota(jnp.int32, head.shape, 1)
    # cols [0, A): mean = tanh(.); cols [A, 2A): scale = exp(0.5 * affine(tanh(.)))
    o_ref[...] = jnp.where(col < ACTION_DIM, head, jnp.exp(0.5 * lv))


def _round_up(n, m):
    return ((n + m - 1) // m) * m


@jax.jit
def push_nn_actor_forward(image, state, wb_p, wpack, bpack):
    """Fused PushNNActor forward.  Works for any batch size: batch is tiled over
    a 'parallel' grid axis (<=128 rows per tile), weights stay resident across
    tiles (constant index_map), and on v7x the tiles shard over both TCs."""
    b = image.shape[0]
    img_flat = image.reshape(b, -1).astype(jnp.float32)
    state_p = jnp.pad(state.astype(jnp.float32),
                      ((0, 0), (0, STATE_PAD - STATE_DIM)))
    x_in = jnp.concatenate([img_flat, state_p], axis=-1).astype(jnp.bfloat16)

    tb = min(128, _round_up(b, 8))
    bp_rows = _round_up(b, tb)
    if bp_rows != b:
        x_in = jnp.pad(x_in, ((0, bp_rows - b), (0, 0)))

    out = pl.pallas_call(
        actor_kernel,
        out_shape=jax.ShapeDtypeStruct((bp_rows, NHEAD), jnp.float32),
        grid_spec=pltpu.PrefetchScalarGridSpec(
            num_scalar_prefetch=0,
            grid=(bp_rows // tb,),
            in_specs=[
                pl.BlockSpec((tb, XCOLS), lambda i: (i, 0)),          # activations
                pl.BlockSpec((IMG_FLAT, HID), lambda i: (0, 0)),      # wb (resident)
                pl.BlockSpec((HID, WPACK_COLS), lambda i: (0, 0)),    # small weights
                pl.BlockSpec((1, BPACK_COLS), lambda i: (0, 0)),      # biases + LN
            ],
            out_specs=pl.BlockSpec((tb, NHEAD), lambda i: (i, 0)),
        ),
        compiler_params=pltpu.CompilerParams(dimension_semantics=("parallel",)),
    )(x_in, wb_p, wpack, bpack)

    out = out[:b]
    return out[:, :ACTION_DIM], out[:, ACTION_DIM:]


# ---------------- deterministic parameter construction -----------------------
def make_params(key):
    def lin(k, fan_in, fan_out):
        kw, kb = jax.random.split(k)
        s = 1.0 / math.sqrt(fan_in)
        w = jax.random.uniform(kw, (fan_in, fan_out), jnp.float32, -s, s)
        b = jax.random.uniform(kb, (1, fan_out), jnp.float32, -s, s)
        return w, b

    ks = jax.random.split(key, 8)
    p = {}
    p["wb"], p["bb"] = lin(ks[0], IMG_FLAT, FEATURE_DIM)     # synthesized backbone
    p["wc"], p["bc"] = lin(ks[1], FEATURE_DIM, VIS_DIM)      # compress linear
    p["lng"] = jnp.ones((1, VIS_DIM), jnp.float32)           # LayerNorm gamma
    p["lnb"] = jnp.zeros((1, VIS_DIM), jnp.float32)          # LayerNorm beta
    p["w0"], p["b0"] = lin(ks[2], STATE_DIM + VIS_DIM, HID)  # mlp_base input linear
    p["w1"], p["b1"] = lin(ks[3], HID, HID)                  # residual block l1
    p["w2"], p["b2"] = lin(ks[4], HID, HID)                  # residual block l2
    p["w3"], p["b3"] = lin(ks[5], HID, HID)                  # mlp_base output linear
    p["wm"], p["bm"] = lin(ks[6], HID, ACTION_DIM)           # mlp_mean
    p["wl"], p["bl"] = lin(ks[7], HID, ACTION_DIM)           # mlp_logvar
    return p


def pack_params(p):
    """Pack 19 logical arrays into 3 device buffers (4 DMAs total with the input):
       wb_p  (1024, 64) bf16 : backbone weight, out-features zero-padded 48->64
       wpack (64, 768)  bf16 : all small weights, one 128-lane slot each
       bpack (1, 1152)  f32  : all biases + LayerNorm affine, 128-lane slots
    """
    wb_p = jnp.pad(p["wb"], ((0, 0), (0, HID - FEATURE_DIM))).astype(jnp.bfloat16)

    def wslot(w):
        s = jnp.zeros((HID, W_SLOT), jnp.float32)
        return s.at[: w.shape[0], : w.shape[1]].set(w)

    w0s, w0v = p["w0"][:STATE_DIM], p["w0"][STATE_DIM:]
    slot_w0 = wslot(w0s)                                           # rows 0:10
    slot_w0 = slot_w0.at[STATE_PAD:STATE_PAD + VIS_DIM, :HID].set(w0v)  # rows 16:48
    whead = jnp.concatenate([p["wm"], p["wl"]], axis=1)            # (64, 14)
    wpack = jnp.concatenate(
        [wslot(p["wc"]), slot_w0, wslot(p["w1"]), wslot(p["w2"]),
         wslot(p["w3"]), wslot(whead)], axis=1).astype(jnp.bfloat16)

    def bslot(bvec):
        s = jnp.zeros((1, W_SLOT), jnp.float32)
        return s.at[:, : bvec.shape[1]].set(bvec)

    bhead = jnp.concatenate([p["bm"], p["bl"]], axis=1)
    bpack = jnp.concatenate(
        [bslot(p["bb"]), bslot(p["bc"]), bslot(p["lng"]), bslot(p["lnb"]),
         bslot(p["b0"]), bslot(p["b1"]), bslot(p["b2"]), bslot(p["b3"]),
         bslot(bhead)], axis=1)
    return wb_p, wpack, bpack


# ---------------- plain-JAX reference (mirrors the torch forward) -------------
def reference_forward(image, state, p, compute_dtype=jnp.float32):
    """fixed_std=None path.  compute_dtype=bfloat16 reproduces the kernel's
    precision policy (bf16 matmul inputs, f32 accumulation); float32 is the
    torch-faithful reference used to bound bf16 quantization error."""
    c = lambda a: a.astype(compute_dtype)
    dot = lambda a, w: jnp.dot(c(a), c(w), preferred_element_type=jnp.float32)
    img = image.reshape(image.shape[0], -1).astype(jnp.float32)
    feat = jnp.maximum(dot(img, p["wb"]) + p["bb"], 0.0)
    z = dot(feat, p["wc"]) + p["bc"]
    mu = jnp.mean(z, axis=-1, keepdims=True)
    var = jnp.mean(z * z, axis=-1, keepdims=True) - mu * mu
    z = (z - mu) * jax.lax.rsqrt(var + LN_EPS) * p["lng"] + p["lnb"]
    img_feat = jnp.maximum(z, 0.0)
    xcat = jnp.concatenate([state.astype(jnp.float32), img_feat], axis=-1)
    x = dot(xcat, p["w0"]) + p["b0"]
    h = dot(_mish(x), p["w1"]) + p["b1"]
    h = dot(_mish(h), p["w2"]) + p["b2"]
    x = x + h
    x = _mish(dot(x, p["w3"]) + p["b3"])
    mean = jnp.tanh(dot(x, p["wm"]) + p["bm"])
    lv = jnp.tanh(dot(x, p["wl"]) + p["bl"])
    lv = LOGVAR_MIN + 0.5 * (LOGVAR_MAX - LOGVAR_MIN) * (lv + 1.0)
    return mean, jnp.exp(0.5 * lv)


if __name__ == "__main__":
    key = jax.random.PRNGKey(0)
    k_img, k_state, k_params = jax.random.split(key, 3)
    image = jax.random.normal(k_img, (B, C, HIMG, WIMG), jnp.float32)   # NCHW
    state = jax.random.normal(k_state, (B, STATE_DIM), jnp.float32)
    params = make_params(k_params)
    wb_p, wpack, bpack = pack_params(params)

    mean, scale = push_nn_actor_forward(image, state, wb_p, wpack, bpack)
    jax.block_until_ready((mean, scale))

    assert mean.shape == (B, ACTION_DIM) and scale.shape == (B, ACTION_DIM)
    assert bool(jnp.all(jnp.isfinite(mean))) and bool(jnp.all(jnp.isfinite(scale)))

    # 1) exact check vs a reference that mirrors the kernel's bf16 matmul policy
    rm, rs = reference_forward(image, state, params, compute_dtype=jnp.bfloat16)
    assert bool(jnp.allclose(mean, rm, atol=2e-3, rtol=2e-3))
    assert bool(jnp.allclose(scale, rs, atol=2e-3, rtol=2e-3))

    # 2) semantic check vs the torch-faithful f32 reference (bf16 quantization headroom)
    fm, fs = reference_forward(image, state, params, compute_dtype=jnp.float32)
    assert bool(jnp.allclose(mean, fm, atol=5e-2, rtol=5e-2))
    assert bool(jnp.allclose(scale, fs, atol=5e-2, rtol=5e-2))

    # TODO(synk): get_distribution (Independent(Normal(...))) and action_low/high
    # rescaling are distribution-object construction on the host, not kernel compute.
    print("KERNEL_OK")
</pallas_src>

<mosaic_0001>
module attributes {stable_mosaic.version = 11 : i64} {
  func.func @actor_kernel(%arg0: i32, %arg1: memref<8x1040xbf16, #tpu.memory_space<vmem>>, %arg2: memref<1024x64xbf16, #tpu.memory_space<vmem>>, %arg3: memref<64x768xbf16, #tpu.memory_space<vmem>>, %arg4: memref<1x1152xf32, #tpu.memory_space<vmem>>, %arg5: memref<8x14xf32, #tpu.memory_space<vmem>>) attributes {dimension_semantics = [#tpu.dimension_semantics<parallel>], iteration_bounds = array<i64: 1>, scalar_prefetch = 0 : i64, scratch_operands = 0 : i64, tpu.core_type = #tpu.core_type<tc>, window_params = [{transform_indices = @transform_0, window_bounds = array<i64: 8, 1040>}, {pipeline_mode = #tpu.pipeline_mode<synchronous>, transform_indices = @transform_1, window_bounds = array<i64: 1024, 64>}, {pipeline_mode = #tpu.pipeline_mode<synchronous>, transform_indices = @transform_2, window_bounds = array<i64: 64, 768>}, {pipeline_mode = #tpu.pipeline_mode<synchronous>, transform_indices = @transform_3, window_bounds = array<i64: 1, 1152>}, {transform_indices = @transform_4, window_bounds = array<i64: 8, 14>}]} {
    %c0 = arith.constant 0 : index
    %c0_0 = arith.constant 0 : index
    %0 = vector.load %arg4[%c0, %c0_0] : memref<1x1152xf32, #tpu.memory_space<vmem>>, vector<1x64xf32>
    %c0_1 = arith.constant 0 : index
    %c128 = arith.constant 128 : index
    %1 = vector.load %arg4[%c0_1, %c128] : memref<1x1152xf32, #tpu.memory_space<vmem>>, vector<1x32xf32>
    %c0_2 = arith.constant 0 : index
    %c256 = arith.constant 256 : index
    %2 = vector.load %arg4[%c0_2, %c256] : memref<1x1152xf32, #tpu.memory_space<vmem>>, vector<1x32xf32>
    %c0_3 = arith.constant 0 : index
    %c384 = arith.constant 384 : index
    %3 = vector.load %arg4[%c0_3, %c384] : memref<1x1152xf32, #tpu.memory_space<vmem>>, vector<1x32xf32>
    %c0_4 = arith.constant 0 : index
    %c512 = arith.constant 512 : index
    %4 = vector.load %arg4[%c0_4, %c512] : memref<1x1152xf32, #tpu.memory_space<vmem>>, vector<1x64xf32>
    %c0_5 = arith.constant 0 : index
    %c640 = arith.constant 640 : index
    %5 = vector.load %arg4[%c0_5, %c640] : memref<1x1152xf32, #tpu.memory_space<vmem>>, vector<1x64xf32>
    %c0_6 = arith.constant 0 : index
    %c768 = arith.constant 768 : index
    %6 = vector.load %arg4[%c0_6, %c768] : memref<1x1152xf32, #tpu.memory_space<vmem>>, vector<1x64xf32>
    %c0_7 = arith.constant 0 : index
    %c896 = arith.constant 896 : index
    %7 = vector.load %arg4[%c0_7, %c896] : memref<1x1152xf32, #tpu.memory_space<vmem>>, vector<1x64xf32>
    %c0_8 = arith.constant 0 : index
    %c1024 = arith.constant 1024 : index
    %8 = vector.load %arg4[%c0_8, %c1024] : memref<1x1152xf32, #tpu.memory_space<vmem>>, vector<1x14xf32>
    %c0_9 = arith.constant 0 : index
    %c0_10 = arith.constant 0 : index
    %9 = vector.load %arg3[%c0_9, %c0_10] : memref<64x768xbf16, #tpu.memory_space<vmem>>, vector<64x32xbf16>
    %c0_11 = arith.constant 0 : index
    %c128_12 = arith.constant 128 : index
    %10 = vector.load %arg3[%c0_11, %c128_12] : memref<64x768xbf16, #tpu.memory_space<vmem>>, vector<16x64xbf16>
    %c16 = arith.constant 16 : index
    %c128_13 = arith.constant 128 : index
    %11 = vector.load %arg3[%c16, %c128_13] : memref<64x768xbf16, #tpu.memory_space<vmem>>, vector<32x64xbf16>
    %c0_14 = arith.constant 0 : index
    %c256_15 = arith.constant 256 : index
    %12 = vector.load %arg3[%c0_14, %c256_15] : memref<64x768xbf16, #tpu.memory_space<vmem>>, vector<64x64xbf16>
    %c0_16 = arith.constant 0 : index
    %c384_17 = arith.constant 384 : index
    %13 = vector.load %arg3[%c0_16, %c384_17] : memref<64x768xbf16, #tpu.memory_space<vmem>>, vector<64x64xbf16>
    %c0_18 = arith.constant 0 : index
    %c512_19 = arith.constant 512 : index
    %14 = vector.load %arg3[%c0_18, %c512_19] : memref<64x768xbf16, #tpu.memory_space<vmem>>, vector<64x64xbf16>
    %c0_20 = arith.constant 0 : index
    %c640_21 = arith.constant 640 : index
    %15 = vector.load %arg3[%c0_20, %c640_21] : memref<64x768xbf16, #tpu.memory_space<vmem>>, vector<64x14xbf16>
    %c0_22 = arith.constant 0 : index
    %c0_23 = arith.constant 0 : index
    %16 = vector.load %arg1[%c0_22, %c0_23] : memref<8x1040xbf16, #tpu.memory_space<vmem>>, vector<8x1024xbf16>
    %c0_24 = arith.constant 0 : index
    %c1024_25 = arith.constant 1024 : index
    %17 = vector.load %arg1[%c0_24, %c1024_25] : memref<8x1040xbf16, #tpu.memory_space<vmem>>, vector<8x16xbf16>
    %c0_26 = arith.constant 0 : index
    %c0_27 = arith.constant 0 : index
    %18 = vector.load %arg2[%c0_26, %c0_27] : memref<1024x64xbf16, #tpu.memory_space<vmem>>, vector<1024x64xbf16>
    %cst = arith.constant dense<0.000000e+00> : vector<8x64xf32>
    %19 = tpu.matmul %16, %18, %cst {dimension_numbers = #tpu.dot_dimension_numbers<[1], [0], [0], [1], [0, 0, 1, 1], [], []>} : vector<8x1024xbf16>, vector<1024x64xbf16>, vector<8x64xf32> -> vector<8x64xf32>
    %20 = vector.broadcast %0 : vector<1x64xf32> to vector<8x64xf32>
    %21 = arith.addf %19, %20 : vector<8x64xf32>
    %cst_28 = arith.constant 0.000000e+00 : f32
    %22 = vector.broadcast %cst_28 : f32 to vector<8x64xf32>
    %23 = arith.maximumf %21, %22 : vector<8x64xf32>
    %24 = arith.truncf %23 : vector<8x64xf32> to vector<8x64xbf16>
    %cst_29 = arith.constant dense<0.000000e+00> : vector<8x32xf32>
    %25 = tpu.matmul %24, %9, %cst_29 {dimension_numbers = #tpu.dot_dimension_numbers<[1], [0], [0], [1], [0, 0, 1, 1], [], []>} : vector<8x64xbf16>, vector<64x32xbf16>, vector<8x32xf32> -> vector<8x32xf32>
    %26 = vector.broadcast %1 : vector<1x32xf32> to vector<8x32xf32>
    %27 = arith.addf %25, %26 : vector<8x32xf32>
    %cst_30 = arith.constant dense<0.000000e+00> : vector<8xf32>
    %28 = vector.multi_reduction <add>, %27, %cst_30 [1] : vector<8x32xf32> to vector<8xf32>
    %29 = vector.shape_cast %28 : vector<8xf32> to vector<8x1xf32>
    %30 = arith.mulf %27, %27 : vector<8x32xf32>
    %cst_31 = arith.constant dense<0.000000e+00> : vector<8xf32>
    %31 = vector.multi_reduction <add>, %30, %cst_31 [1] : vector<8x32xf32> to vector<8xf32>
    %32 = vector.shape_cast %31 : vector<8xf32> to vector<8x1xf32>
    %cst_32 = arith.constant 3.125000e-02 : f32
    %33 = vector.broadcast %cst_32 : f32 to vector<8x1xf32>
    %34 = arith.mulf %29, %33 : vector<8x1xf32>
    %cst_33 = arith.constant 3.125000e-02 : f32
    %35 = vector.broadcast %cst_33 : f32 to vector<8x1xf32>
    %36 = arith.mulf %32, %35 : vector<8x1xf32>
    %37 = arith.mulf %34, %34 : vector<8x1xf32>
    %38 = arith.subf %36, %37 : vector<8x1xf32>
    %39 = vector.broadcast %34 : vector<8x1xf32> to vector<8x32xf32>
    %40 = arith.subf %27, %39 : vector<8x32xf32>
    %cst_34 = arith.constant 9.99999974E-6 : f32
    %41 = vector.broadcast %cst_34 : f32 to vector<8x1xf32>
    %42 = arith.addf %38, %41 : vector<8x1xf32>
    %43 = math.rsqrt %42 : vector<8x1xf32>
    %44 = vector.broadcast %43 : vector<8x1xf32> to vector<8x32xf32>
    %45 = arith.mulf %40, %44 : vector<8x32xf32>
    %46 = vector.broadcast %2 : vector<1x32xf32> to vector<8x32xf32>
    %47 = arith.mulf %45, %46 : vector<8x32xf32>
    %48 = vector.broadcast %3 : vector<1x32xf32> to vector<8x32xf32>
    %49 = arith.addf %47, %48 : vector<8x32xf32>
    %cst_35 = arith.constant 0.000000e+00 : f32
    %50 = vector.broadcast %cst_35 : f32 to vector<8x32xf32>
    %51 = arith.maximumf %49, %50 : vector<8x32xf32>
    %cst_36 = arith.constant dense<0.000000e+00> : vector<8x64xf32>
    %52 = tpu.matmul %17, %10, %cst_36 {dimension_numbers = #tpu.dot_dimension_numbers<[1], [0], [0], [1], [0, 0, 1, 1], [], []>} : vector<8x16xbf16>, vector<16x64xbf16>, vector<8x64xf32> -> vector<8x64xf32>
    %53 = arith.truncf %51 : vector<8x32xf32> to vector<8x32xbf16>
    %cst_37 = arith.constant dense<0.000000e+00> : vector<8x64xf32>
    %54 = tpu.matmul %53, %11, %cst_37 {dimension_numbers = #tpu.dot_dimension_numbers<[1], [0], [0], [1], [0, 0, 1, 1], [], []>} : vector<8x32xbf16>, vector<32x64xbf16>, vector<8x64xf32> -> vector<8x64xf32>
    %55 = arith.addf %52, %54 : vector<8x64xf32>
    %56 = vector.broadcast %4 : vector<1x64xf32> to vector<8x64xf32>
    %57 = arith.addf %55, %56 : vector<8x64xf32>
    %cst_38 = arith.constant 2.000000e+01 : f32
    %58 = vector.broadcast %cst_38 : f32 to vector<8x64xf32>
    %59 = arith.minimumf %57, %58 : vector<8x64xf32>
    %60 = math.exp %59 : vector<8x64xf32>
    %cst_39 = arith.constant 1.000000e+00 : f32
    %61 = vector.broadcast %cst_39 : f32 to vector<8x64xf32>
    %62 = arith.addf %61, %60 : vector<8x64xf32>
    %cst_40 = arith.constant 1.000000e+00 : f32
    %63 = vector.broadcast %cst_40 : f32 to vector<8x64xf32>
    %64 = arith.addf %63, %60 : vector<8x64xf32>
    %65 = arith.mulf %62, %64 : vector<8x64xf32>
    %cst_41 = arith.constant 2.000000e+01 : f32
    %66 = vector.broadcast %cst_41 : f32 to vector<8x64xf32>
    %67 = arith.cmpf ogt, %57, %66 : vector<8x64xf32>
    %cst_42 = arith.constant 1.000000e+00 : f32
    %68 = vector.broadcast %cst_42 : f32 to vector<8x64xf32>
    %69 = arith.subf %65, %68 : vector<8x64xf32>
    %cst_43 = arith.constant 1.000000e+00 : f32
    %70 = vector.broadcast %cst_43 : f32 to vector<8x64xf32>
    %71 = arith.addf %65, %70 : vector<8x64xf32>
    %72 = arith.divf %69, %71 : vector<8x64xf32>
    %cst_44 = arith.constant 1.000000e+00 : f32
    %73 = vector.broadcast %cst_44 : f32 to vector<8x64xf32>
    %74 = arith.select %67, %73, %72 : vector<8x64xi1>, vector<8x64xf32>
    %75 = arith.mulf %57, %74 : vector<8x64xf32>
    %76 = arith.truncf %75 : vector<8x64xf32> to vector<8x64xbf16>
    %cst_45 = arith.constant dense<0.000000e+00> : vector<8x64xf32>
    %77 = tpu.matmul %76, %12, %cst_45 {dimension_numbers = #tpu.dot_dimension_numbers<[1], [0], [0], [1], [0, 0, 1, 1], [], []>} : vector<8x64xbf16>, vector<64x64xbf16>, vector<8x64xf32> -> vector<8x64xf32>
    %78 = vector.broadcast %5 : vector<1x64xf32> to vector<8x64xf32>
    %79 = arith.addf %77, %78 : vector<8x64xf32>
    %cst_46 = arith.constant 2.000000e+01 : f32
    %80 = vector.broadcast %cst_46 : f32 to vector<8x64xf32>
    %81 = arith.minimumf %79, %80 : vector<8x64xf32>
    %82 = math.exp %81 : vector<8x64xf32>
    %cst_47 = arith.constant 1.000000e+00 : f32
    %83 = vector.broadcast %cst_47 : f32 to vector<8x64xf32>
    %84 = arith.addf %83, %82 : vector<8x64xf32>
    %cst_48 = arith.constant 1.000000e+00 : f32
    %85 = vector.broadcast %cst_48 : f32 to vector<8x64xf32>
    %86 = arith.addf %85, %82 : vector<8x64xf32>
    %87 = arith.mulf %84, %86 : vector<8x64xf32>
    %cst_49 = arith.constant 2.000000e+01 : f32
    %88 = vector.broadcast %cst_49 : f32 to vector<8x64xf32>
    %89 = arith.cmpf ogt, %79, %88 : vector<8x64xf32>
    %cst_50 = arith.constant 1.000000e+00 : f32
    %90 = vector.broadcast %cst_50 : f32 to vector<8x64xf32>
    %91 = arith.subf %87, %90 : vector<8x64xf32>
    %cst_51 = arith.constant 1.000000e+00 : f32
    %92 = vector.broadcast %cst_51 : f32 to vector<8x64xf32>
    %93 = arith.addf %87, %92 : vector<8x64xf32>
    %94 = arith.divf %91, %93 : vector<8x64xf32>
    %cst_52 = arith.constant 1.000000e+00 : f32
    %95 = vector.broadcast %cst_52 : f32 to vector<8x64xf32>
    %96 = arith.select %89, %95, %94 : vector<8x64xi1>, vector<8x64xf32>
    %97 = arith.mulf %79, %96 : vector<8x64xf32>
    %98 = arith.truncf %97 : vector<8x64xf32> to vector<8x64xbf16>
    %cst_53 = arith.constant dense<0.000000e+00> : vector<8x64xf32>
    %99 = tpu.matmul %98, %13, %cst_53 {dimension_numbers = #tpu.dot_dimension_numbers<[1], [0], [0], [1], [0, 0, 1, 1], [], []>} : vector<8x64xbf16>, vector<64x64xbf16>, vector<8x64xf32> -> vector<8x64xf32>
    %100 = vector.broadcast %6 : vector<1x64xf32> to vector<8x64xf32>
    %101 = arith.addf %99, %100 : vector<8x64xf32>
    %102 = arith.addf %57, %101 : vector<8x64xf32>
    %103 = arith.truncf %102 : vector<8x64xf32> to vector<8x64xbf16>
    %cst_54 = arith.constant dense<0.000000e+00> : vector<8x64xf32>
    %104 = tpu.matmul %103, %14, %cst_54 {dimension_numbers = #tpu.dot_dimension_numbers<[1], [0], [0], [1], [0, 0, 1, 1], [], []>} : vector<8x64xbf16>, vector<64x64xbf16>, vector<8x64xf32> -> vector<8x64xf32>
    %105 = vector.broadcast %7 : vector<1x64xf32> to vector<8x64xf32>
    %106 = arith.addf %104, %105 : vector<8x64xf32>
    %cst_55 = arith.constant 2.000000e+01 : f32
    %107 = vector.broadcast %cst_55 : f32 to vector<8x64xf32>
    %108 = arith.minimumf %106, %107 : vector<8x64xf32>
    %109 = math.exp %108 : vector<8x64xf32>
    %cst_56 = arith.constant 1.000000e+00 : f32
    %110 = vector.broadcast %cst_56 : f32 to vector<8x64xf32>
    %111 = arith.addf %110, %109 : vector<8x64xf32>
    %cst_57 = arith.constant 1.000000e+00 : f32
    %112 = vector.broadcast %cst_57 : f32 to vector<8x64xf32>
    %113 = arith.addf %112, %109 : vector<8x64xf32>
    %114 = arith.mulf %111, %113 : vector<8x64xf32>
    %cst_58 = arith.constant 2.000000e+01 : f32
    %115 = vector.broadcast %cst_58 : f32 to vector<8x64xf32>
    %116 = arith.cmpf ogt, %106, %115 : vector<8x64xf32>
    %cst_59 = arith.constant 1.000000e+00 : f32
    %117 = vector.broadcast %cst_59 : f32 to vector<8x64xf32>
    %118 = arith.subf %114, %117 : vector<8x64xf32>
    %cst_60 = arith.constant 1.000000e+00 : f32
    %119 = vector.broadcast %cst_60 : f32 to vector<8x64xf32>
    %120 = arith.addf %114, %119 : vector<8x64xf32>
    %121 = arith.divf %118, %120 : vector<8x64xf32>
    %cst_61 = arith.constant 1.000000e+00 : f32
    %122 = vector.broadcast %cst_61 : f32 to vector<8x64xf32>
    %123 = arith.select %116, %122, %121 : vector<8x64xi1>, vector<8x64xf32>
    %124 = arith.mulf %106, %123 : vector<8x64xf32>
    %125 = arith.truncf %124 : vector<8x64xf32> to vector<8x64xbf16>
    %cst_62 = arith.constant dense<0.000000e+00> : vector<8x14xf32>
    %126 = tpu.matmul %125, %15, %cst_62 {dimension_numbers = #tpu.dot_dimension_numbers<[1], [0], [0], [1], [0, 0, 1, 1], [], []>} : vector<8x64xbf16>, vector<64x14xbf16>, vector<8x14xf32> -> vector<8x14xf32>
    %127 = vector.broadcast %8 : vector<1x14xf32> to vector<8x14xf32>
    %128 = arith.addf %126, %127 : vector<8x14xf32>
    %129 = math.tanh %128 : vector<8x14xf32>
    %cst_63 = arith.constant 1.000000e+00 : f32
    %130 = vector.broadcast %cst_63 : f32 to vector<8x14xf32>
    %131 = arith.addf %129, %130 : vector<8x14xf32>
    %cst_64 = arith.constant 4.60517025 : f32
    %132 = vector.broadcast %cst_64 : f32 to vector<8x14xf32>
    %133 = arith.mulf %132, %131 : vector<8x14xf32>
    %cst_65 = arith.constant -9.21034049 : f32
    %134 = vector.broadcast %cst_65 : f32 to vector<8x14xf32>
    %135 = arith.addf %134, %133 : vector<8x14xf32>
    %136 = tpu.iota {dimensions = array<i32: 1>} : vector<8x14xi32>
    %c7_i32 = arith.constant 7 : i32
    %137 = vector.broadcast %c7_i32 : i32 to vector<8x14xi32>
    %138 = arith.cmpi slt, %136, %137 : vector<8x14xi32>
    %cst_66 = arith.constant 5.000000e-01 : f32
    %139 = vector.broadcast %cst_66 : f32 to vector<8x14xf32>
    %140 = arith.mulf %139, %135 : vector<8x14xf32>
    %141 = math.exp %140 : vector<8x14xf32>
    %142 = arith.select %138, %129, %141 : vector<8x14xi1>, vector<8x14xf32>
    %c0_67 = arith.constant 0 : index
    %c0_68 = arith.constant 0 : index
    %143 = vector.load %arg5[%c0_67, %c0_68] : memref<8x14xf32, #tpu.memory_space<vmem>>, vector<8x14xf32>
    tpu.vector_store %arg5[%c0_67, %c0_68], %142 {strides = array<i32>} : memref<8x14xf32, #tpu.memory_space<vmem>>, vector<8x14xf32>,
    return
  }
  func.func @transform_0(%arg0: i32) -> (i32, i32) {
    %c0_i32 = arith.constant 0 : i32
    %c0_i32_0 = arith.constant 0 : i32
    return %arg0, %c0_i32 : i32, i32
  }
  func.func @transform_1(%arg0: i32) -> (i32, i32) {
    %c0_i32 = arith.constant 0 : i32
    %c0_i32_0 = arith.constant 0 : i32
    %c0_i32_1 = arith.constant 0 : i32
    return %c0_i32, %c0_i32_0 : i32, i32
  }
  func.func @transform_2(%arg0: i32) -> (i32, i32) {
    %c0_i32 = arith.constant 0 : i32
    %c0_i32_0 = arith.constant 0 : i32
    %c0_i32_1 = arith.constant 0 : i32
    return %c0_i32, %c0_i32_0 : i32, i32
  }
  func.func @transform_3(%arg0: i32) -> (i32, i32) {
    %c0_i32 = arith.constant 0 : i32
    %c0_i32_0 = arith.constant 0 : i32
    %c0_i32_1 = arith.constant 0 : i32
    return %c0_i32, %c0_i32_0 : i32, i32
  }
  func.func @transform_4(%arg0: i32) -> (i32, i32) {
    %c0_i32 = arith.constant 0 : i32
    %c0_i32_0 = arith.constant 0 : i32
    return %arg0, %c0_i32 : i32, i32
  }
}

</mosaic_0001>

<bundles_post_ra>
// kernel: push_nn_actor_forward.1
= control target key start
LH: loop header
LB: loop body
LE: loop exit
PB: predicated region body
PF: predicated region fallthrough
CT: control target
= control target key end

     0   :  { %vm1776_vm0 = vmmov 0   ;;  %vm816_vm1 = vcmask 523264   ;;  %vm860_vm2 = vcmask 261120   ;;  %vm953_vm3 = vcmask 130048   ;;  %s2159_s1 = inlined_call_operand.vmem [shape: bf16[1024,64], index: 1, kind: input, shape index: {}]   ;;  %s2160_s0 = inlined_call_operand.vmem [shape: bf16[8,1040], index: 0, kind: input, shape index: {}]   ;;  %s2161_s2 = inlined_call_operand.vmem [shape: bf16[64,768], index: 2, kind: input, shape index: {}]   ;;  %s2162_s3 = inlined_call_operand.vmem [shape: f32[1,1152], index: 3, kind: input, shape index: {}]   ;;  %s2163_s4 = inlined_call_operand.vmem [shape: f32[8,14], index: 4, kind: output, shape index: {}]  }
   0x1   :  { %v1662_v0 = vld [vmem:[%s2159_s1 + $0x78] sm:$0xff]   ;;  %v1666_v4 = vld [vmem:[%s2159_s1 + $0x70] sm:$0xff]   ;;  %v1670_v8 = vld [vmem:[%s2159_s1 + $0x68] sm:$0xff]   ;;  %vm1348_vm8 = vcmask 113664  }
   0x2   :  { %v1663_v1 = vld [vmem:[%s2159_s1 + $0xf8] sm:$0xff]   ;;  %1468 = vmatprep.subr.bf16.mxu0 %v1662_v0  ;;  %v1667_v5 = vld [vmem:[%s2159_s1 + $0xf0] sm:$0xff]   ;;  %v1671_v9 = vld [vmem:[%s2159_s1 + $0xe8] sm:$0xff]  }
   0x3   :  { %v1664_v2 = vld [vmem:[%s2159_s1 + $0x38] sm:$0xff]   ;;  %1490 = vmatprep.subr.bf16.mxu1 %v1663_v1  ;;  %v1668_v6 = vld [vmem:[%s2159_s1 + $0x30] sm:$0xff]   ;;  %v1672_v10 = vld [vmem:[%s2159_s1 + $0x28] sm:$0xff]  }
   0x4   :  { %v1665_v3 = vld [vmem:[%s2159_s1 + $0xb8] sm:$0xff]   ;;  %1469 = vmatpush3.bf16.msra.mxu0 %v1664_v2  ;;  %v1669_v7 = vld [vmem:[%s2159_s1 + $0xb0] sm:$0xff]   ;;  %v1673_v11 = vld [vmem:[%s2159_s1 + $0xa8] sm:$0xff]  }
   0x5   :  { %1491 = vmatpush3.bf16.msra.mxu1 %v1665_v3  ;;  %1470 = vmatprep.subr.bf16.mxu0 %v1666_v4  ;;  %v1674_v12 = vld [vmem:[%s2159_s1 + $0x60] sm:$0xff]   ;;  %v1678_v16 = vld [vmem:[%s2159_s1 + $0x58] sm:$0xff]   ;;  %v1682_v20 = vld [vmem:[%s2159_s1 + $0x50] sm:$0xff]  }
   0x6   :  { %1492 = vmatprep.subr.bf16.mxu1 %v1667_v5  ;;  %v1675_v13 = vld [vmem:[%s2159_s1 + $0xe0] sm:$0xff]   ;;  %v1679_v17 = vld [vmem:[%s2159_s1 + $0xd8] sm:$0xff]   ;;  %v1683_v21 = vld [vmem:[%s2159_s1 + $0xd0] sm:$0xff]  }
   0x7   :  { %v1676_v14 = vld [vmem:[%s2159_s1 + $0x20] sm:$0xff]   ;;  %v1680_v18 = vld [vmem:[%s2159_s1 + $0x18] sm:$0xff]   ;;  %v1684_v22 = vld [vmem:[%s2159_s1 + $0x10] sm:$0xff]  }
   0x8   :  { %1471 = vmatpush3.bf16.msra.mxu0 %v1668_v6  ;;  %v1677_v15 = vld [vmem:[%s2159_s1 + $0xa0] sm:$0xff]   ;;  %v1681_v19 = vld [vmem:[%s2159_s1 + $0x98] sm:$0xff]   ;;  %v1685_v23 = vld [vmem:[%s2159_s1 + $0x90] sm:$0xff]  }
   0x9   :  { %1493 = vmatpush3.bf16.msra.mxu1 %v1669_v7  ;;  %1472 = vmatprep.subr.bf16.mxu0 %v1670_v8  ;;  %v1686_v24 = vld [vmem:[%s2159_s1 + $0x48] sm:$0xff]   ;;  %v1690_v28 = vld [vmem:[%s2159_s1 + $0x40] sm:$0xff]   ;;  %v1698_v38 = vld [vmem:[%s2159_s1 + $0x178] sm:$0xff]  }
   0xa   :  { %1494 = vmatprep.subr.bf16.mxu1 %v1671_v9  ;;  %v1687_v25 = vld [vmem:[%s2159_s1 + $0xc8] sm:$0xff]   ;;  %v1691_v29 = vld [vmem:[%s2159_s1 + $0xc0] sm:$0xff]   ;;  %v1699_v39 = vld [vmem:[%s2159_s1 + $0x1f8] sm:$0xff]  }
   0xb   :  { %v1688_v26 = vld [vmem:[%s2159_s1 + $0x8] sm:$0xff]   ;;  %v1692_v30 = vld [vmem:[%s2159_s1] sm:$0xff]   ;;  %v1700_v40 = vld [vmem:[%s2159_s1 + $0x138] sm:$0xff]  }
   0xc   :  { %1473 = vmatpush3.bf16.msra.mxu0 %v1672_v10  ;;  %v1689_v27 = vld [vmem:[%s2159_s1 + $0x88] sm:$0xff]   ;;  %v1693_v31 = vld [vmem:[%s2159_s1 + $0x80] sm:$0xff]   ;;  %v1701_v41 = vld [vmem:[%s2159_s1 + $0x1b8] sm:$0xff]  }
   0xd   :  { %1495 = vmatpush3.bf16.msra.mxu1 %v1673_v11  ;;  %1474 = vmatprep.subr.bf16.mxu0 %v1674_v12  ;;  %v73_v32 = vld [vmem:[%s2160_s0] sm:$0xff]  ;;  %v74_v33 = vld [vmem:[%s2160_s0 + $0x8] sm:$0xff]  ;;  %v1702_v42 = vld [vmem:[%s2159_s1 + $0x170] sm:$0xff]   ;;  %v1775_v12 = vmov 0.0  }
   0xe   :  { %1496 = vmatprep.subr.bf16.mxu1 %v1675_v13  ;;  %v1355_v34 = vcombine.low %v73_v32, %v73_v32  ;;  %v1356_v35 = vcombine.high %v73_v32, %v73_v32  ;;  %v1357_v36 = vcombine.low %v74_v33, %v74_v33  ;;  %v1358_v37 = vcombine.high %v74_v33, %v74_v33  ;;  %v1703_v43 = vld [vmem:[%s2159_s1 + $0x1f0] sm:$0xff]   ;;  %v1706_v46 = vld [vmem:[%s2159_s1 + $0x168] sm:$0xff]   ;;  %v1710_v50 = vld [vmem:[%s2159_s1 + $0x160] sm:$0xff]  }
   0xf   :  { %v1704_v44 = vld [vmem:[%s2159_s1 + $0x130] sm:$0xff]   ;;  %v1707_v47 = vld [vmem:[%s2159_s1 + $0x1e8] sm:$0xff]   ;;  %v1711_v51 = vld [vmem:[%s2159_s1 + $0x1e0] sm:$0xff]  }
  0x10   :  { %1475 = vmatpush3.bf16.msra.mxu0 %v1676_v14  ;;  %656 = vmatprep.mubr.bf16.mxu0 %v1356_v35  ;;  %v1705_v45 = vld [vmem:[%s2159_s1 + $0x1b0] sm:$0xff]   ;;  %v1708_v48 = vld [vmem:[%s2159_s1 + $0x128] sm:$0xff]   ;;  %v1712_v52 = vld [vmem:[%s2159_s1 + $0x120] sm:$0xff]  }
  0x11   :  { %1497 = vmatpush3.bf16.msra.mxu1 %v1677_v15  ;;  %1476 = vmatprep.subr.bf16.mxu0 %v1678_v16  ;;  %v1709_v49 = vld [vmem:[%s2159_s1 + $0x1a8] sm:$0xff]   ;;  %v1713_v53 = vld [vmem:[%s2159_s1 + $0x1a0] sm:$0xff]   ;;  %v1714_v54 = vld [vmem:[%s2159_s1 + $0x158] sm:$0xff]  }
  0x12   :  { %1498 = vmatprep.subr.bf16.mxu1 %v1679_v17  ;;  %696 = vmatprep.mubr.bf16.mxu1 %v1358_v37  ;;  %v1715_v55 = vld [vmem:[%s2159_s1 + $0x1d8] sm:$0xff]   ;;  %v1718_v58 = vld [vmem:[%s2159_s1 + $0x150] sm:$0xff]   ;;  %v1722_v62 = vld [vmem:[%s2159_s1 + $0x148] sm:$0xff]  }
  0x13   :  { %v1716_v56 = vld [vmem:[%s2159_s1 + $0x118] sm:$0xff]   ;;  %v1719_v59 = vld [vmem:[%s2159_s1 + $0x1d0] sm:$0xff]   ;;  %v1723_v63 = vld [vmem:[%s2159_s1 + $0x1c8] sm:$0xff]  }
  0x14   :  { %1477 = vmatpush3.bf16.msra.mxu0 %v1680_v18  ;;  %v1717_v57 = vld [vmem:[%s2159_s1 + $0x198] sm:$0xff]   ;;  %v1720_v60 = vld [vmem:[%s2159_s1 + $0x110] sm:$0xff]   ;;  %v1724_v0 = vld [vmem:[%s2159_s1 + $0x108] sm:$0xff]  }
  0x15   :  { %1499 = vmatpush3.bf16.msra.mxu1 %v1681_v19  ;;  %1478 = vmatprep.subr.bf16.mxu0 %v1682_v20  ;;  %v1721_v61 = vld [vmem:[%s2159_s1 + $0x190] sm:$0xff]   ;;  %v1725_v1 = vld [vmem:[%s2159_s1 + $0x188] sm:$0xff]   ;;  %v1726_v2 = vld [vmem:[%s2159_s1 + $0x140] sm:$0xff]  }
  0x16   :  { %1500 = vmatprep.subr.bf16.mxu1 %v1683_v21  ;;  %v1727_v3 = vld [vmem:[%s2159_s1 + $0x1c0] sm:$0xff]   ;;  %v75_v6 = vld [vmem:[%s2160_s0 + $0x10] sm:$0xff]  ;;  %v76_v9 = vld [vmem:[%s2160_s0 + $0x18] sm:$0xff] }
  0x17   :  { %v1728_v4 = vld [vmem:[%s2159_s1 + $0x100] sm:$0xff]   ;;  %v1359_v7 = vcombine.low %v75_v6, %v75_v6  ;;  %v1360_v8 = vcombine.high %v75_v6, %v75_v6  ;;  %v1361_v10 = vcombine.low %v76_v9, %v76_v9  ;;  %v1362_v11 = vcombine.high %v76_v9, %v76_v9  ;;  %v1734_v13 = vld [vmem:[%s2161_s2 + $0x90] ss:$24 sps:$4 sm:$0xff]  }
  0x18   :  { %1479 = vmatpush3.bf16.msra.mxu0 %v1684_v22  ;;  %v1729_v5 = vld [vmem:[%s2159_s1 + $0x180] sm:$0xff]   ;;  %v1736_v15 = vld [vmem:[%s2161_s2 + $0x30] ss:$24 sps:$4 sm:$0xff]  }
  0x19   :  { %1501 = vmatpush3.bf16.msra.mxu1 %v1685_v23  ;;  %1480 = vmatprep.subr.bf16.mxu0 %v1686_v24  ;;  %v1735_v14 = vld [vmem:[%s2161_s2 + $0x60] ss:$24 sps:$4 sm:$0xff]   ;;  %v1740_v6 = vld [vmem:[%s2161_s2 + $0x4] ss:$24 sps:$4 sm:$0xff]  }
  0x1a   :  { %1502 = vmatprep.subr.bf16.mxu1 %v1687_v25  ;;  %v1737_v16 = vld [vmem:[%s2161_s2] ss:$24 sps:$4 sm:$0xff]  }
  0x1b   :  { %v1741_v9 = vld [vmem:[%s2161_s2 + $0x98] ss:$24 sps:$4 sm:$0xff]  }
  0x1c   :  { %1481 = vmatpush3.bf16.msra.mxu0 %v1688_v26  ;;  %v1354_v26 = vld [vmem:[%s2162_s3] ss:$0 sm:$0xff] }
  0x1d   :  { %1503 = vmatpush3.bf16.msra.mxu1 %v1689_v27  ;;  %1482 = vmatprep.subr.bf16.mxu0 %v1690_v28 }
  0x1e   :  { %1504 = vmatprep.subr.bf16.mxu1 %v1691_v29 }
  0x20   :  { %1483 = vmatpush3.bf16.msra.mxu0 %v1692_v30 }
  0x21   :  { %1505 = vmatpush3.bf16.msra.mxu1 %v1693_v31  ;;  %1512 = vmatprep.subr.bf16.mxu0 %v1698_v38 }
  0x22   :  { %1534 = vmatprep.subr.bf16.mxu1 %v1699_v39 }
  0x23   :  { %657 = vmatmul.mubr.bf16.vlgmr.msra.gmra.mxu0 %v1355_v34 }
  0x24   :  { %697 = vmatmul.mubr.bf16.vlgmr.msra.gmra.mxu1 %v1357_v36  ;;  %1513 = vmatpush3.bf16.msra.mxu0 %v1700_v40 }
  0x25   :  { %1535 = vmatpush3.bf16.msra.mxu1 %v1701_v41  ;;  %1514 = vmatprep.subr.bf16.mxu0 %v1702_v42 }
  0x26   :  { %1536 = vmatprep.subr.bf16.mxu1 %v1703_v43  ;;  %736 = vmatprep.mubr.bf16.mxu0 %v1360_v8  ;;  %v77_v8 = vld [vmem:[%s2160_s0 + $0x20] sm:$0xf] }
  0x27   :  { %776 = vmatprep.mubr.bf16.mxu1 %v1362_v11  ;;  %v1743_v11 = vld [vmem:[%s2161_s2 + $0x38] ss:$24 sps:$4 sm:$0xff]  }
  0x28   :  { %1515 = vmatpush3.bf16.msra.mxu0 %v1704_v44  ;;  %v1427_v44 = vld [vmem:[%s2162_s3 + $0x1] ss:$0 sm:$0xff] }
  0x29   :  { %1537 = vmatpush3.bf16.msra.mxu1 %v1705_v45  ;;  %1516 = vmatprep.subr.bf16.mxu0 %v1706_v46 }
  0x2a   :  { %1538 = vmatprep.subr.bf16.mxu1 %v1707_v47 }
  0x2c   :  { %1517 = vmatpush3.bf16.msra.mxu0 %v1708_v48 }
  0x2d   :  { %1539 = vmatpush3.bf16.msra.mxu1 %v1709_v49  ;;  %1518 = vmatprep.subr.bf16.mxu0 %v1710_v50 }
  0x2e   :  { %1540 = vmatprep.subr.bf16.mxu1 %v1711_v51 }
  0x30   :  { %1519 = vmatpush3.bf16.msra.mxu0 %v1712_v52 }
  0x31   :  { %1541 = vmatpush3.bf16.msra.mxu1 %v1713_v53  ;;  %1520 = vmatprep.subr.bf16.mxu0 %v1714_v54  ;;  %v1738_v53 = vld [vmem:[%s2161_s2 + $0x64] ss:$24 sps:$4 sm:$0xff]   ;;  %v1739_v54 = vld [vmem:[%s2161_s2 + $0x34] ss:$24 sps:$4 sm:$0xff]  }
  0x32   :  { %1542 = vmatprep.subr.bf16.mxu1 %v1715_v55 }
  0x34   :  { %1521 = vmatpush3.bf16.msra.mxu0 %v1716_v56 }
  0x35   :  { %1543 = vmatpush3.bf16.msra.mxu1 %v1717_v57  ;;  %1522 = vmatprep.subr.bf16.mxu0 %v1718_v58 }
  0x36   :  { %1544 = vmatprep.subr.bf16.mxu1 %v1719_v59 }
  0x38   :  { %1523 = vmatpush3.bf16.msra.mxu0 %v1720_v60 }
  0x39   :  { %1545 = vmatpush3.bf16.msra.mxu1 %v1721_v61  ;;  %1524 = vmatprep.subr.bf16.mxu0 %v1722_v62 }
  0x3a   :  { %1546 = vmatprep.subr.bf16.mxu1 %v1723_v63 }
  0x3c   :  { %1525 = vmatpush3.bf16.msra.mxu0 %v1724_v0  ;;  %v1433_v0 = vld [vmem:[%s2162_s3 + $0x2] ss:$0 sm:$0xff] }
  0x3d   :  { %1547 = vmatpush3.bf16.msra.mxu1 %v1725_v1  ;;  %1526 = vmatprep.subr.bf16.mxu0 %v1726_v2  ;;  %v1434_v2 = vld [vmem:[%s2162_s3 + $0x3] ss:$0 sm:$0xff] }
  0x3e   :  { %1548 = vmatprep.subr.bf16.mxu1 %v1727_v3 }
  0x40   :  { %1527 = vmatpush3.bf16.msra.mxu0 %v1728_v4 }
  0x41   :  { %1549 = vmatpush3.bf16.msra.mxu1 %v1729_v5  ;;  %1586 = vmatprep.subr.bf16.mxu0 %v1775_v12 }
  0x42   :  { %1598 = vmatprep.subr.bf16.mxu1 %v1775_v12 }
  0x43   :  { %737 = vmatmul.mubr.bf16.vlgmr.msra.gmra.mxu0 %v1359_v7 }
  0x44   :  { %777 = vmatmul.mubr.bf16.vlgmr.msra.gmra.mxu1 %v1361_v10  ;;  %1587 = vmatpush3.bf16.msra.mxu0 %v1734_v13  ;;  %v1742_v10 = vld [vmem:[%s2161_s2 + $0x68] ss:$24 sps:$4 sm:$0xff]  }
  0x45   :  { %1588 = vmatprep.subr.bf16.mxu0 %v1775_v12  ;;  %1594 = vmatprep.mubr.msk.bf16.mxu0 %vm1776_vm0, %v1775_v12  ;;  %v1744_v13 = vld [vmem:[%s2161_s2 + $0x8] ss:$24 sps:$4 sm:$0xff]  }
  0x46   :  { %1602 = vmatprep.mubr.msk.bf16.mxu1 %vm1776_vm0, %v1775_v12  ;;  %1599 = vmatpush3.bf16.msra.mxu1 %v1738_v53 }
  0x47   :  { %1600 = vmatprep.subr.bf16.mxu1 %v1775_v12 }
  0x48   :  { %1589 = vmatpush3.bf16.msra.mxu0 %v1735_v14 }
  0x49   :  { %1590 = vmatprep.subr.bf16.mxu0 %v1775_v12 }
  0x4a   :  { %1601 = vmatpush3.bf16.msra.mxu1 %v1739_v54 }
  0x4b   :  { %1606 = vmatprep.subr.bf16.mxu1 %v1775_v12 }
  0x4c   :  { %1591 = vmatpush3.bf16.msra.mxu0 %v1736_v15 }
  0x4d   :  { %1592 = vmatprep.subr.bf16.mxu0 %v1775_v12 }
  0x50   :  { %1593 = vmatpush3.bf16.msra.mxu0 %v1737_v16 }
  0x51   :  { %1612 = vmatprep.subr.bf16.mxu0 %v1775_v12 }
  0xe3   :  { %v1484_v17 = vpop.f32.mrf.mxu0 }
  0xe4   :  { %v1506_v18 = vpop.f32.mrf.mxu1 }
  0xe5   :  { %v1485_v19 = vpop.f32.mrf.mxu0 }
  0xe6   :  { %v1507_v20 = vpop.f32.mrf.mxu1  ;;  %v1486_v25 = vadd.f32 %v1485_v19, %v1484_v17 }
  0xe7   :  { %v1487_v21 = vpop.f32.mrf.mxu0  ;;  %v1508_v28 = vadd.f32 %v1507_v20, %v1506_v18  ;;  %v1440_v18 = vld [vmem:[%s2162_s3 + $0x4] ss:$0 sm:$0xff] }
  0xe8   :  { %v1509_v22 = vpop.f32.mrf.mxu1  ;;  %v659_v27 = vadd.f32 %v1486_v25, %v1354_v26 }
  0xe9   :  { %v1488_v23 = vpop.f32.mrf.mxu0 }
  0xea   :  { %v1510_v24 = vpop.f32.mrf.mxu1  ;;  %v699_v33 = vadd.f32 %v1508_v28, %v659_v27 }
 0x103   :  { %v1528_v29 = vpop.f32.mrf.mxu0 }
 0x104   :  { %v1550_v30 = vpop.f32.mrf.mxu1 }
 0x105   :  { %v1529_v31 = vpop.f32.mrf.mxu0 }
 0x106   :  { %v1551_v32 = vpop.f32.mrf.mxu1  ;;  %v1530_v34 = vadd.f32 %v1529_v31, %v1528_v29 }
 0x107   :  { %v1531_v35 = vpop.f32.mrf.mxu0  ;;  %v1552_v38 = vadd.f32 %v1551_v32, %v1550_v30 }
 0x108   :  { %v1553_v36 = vpop.f32.mrf.mxu1  ;;  %v739_v37 = vadd.f32 %v1530_v34, %v699_v33 }
 0x109   :  { %v1532_v39 = vpop.f32.mrf.mxu0 }
 0x10a   :  { %v1554_v40 = vpop.f32.mrf.mxu1  ;;  %v779_v41 = vadd.f32 %v1552_v38, %v739_v37  ;;  %v1745_v37 = vld [vmem:[%s2161_s2 + $0x9c] ss:$24 sps:$4 sm:$0xff]   ;;  %v1746_v38 = vld [vmem:[%s2161_s2 + $0x6c] ss:$24 sps:$4 sm:$0xff]  }
 0x10b   :  { %v1747_v39 = vld [vmem:[%s2161_s2 + $0x3c] ss:$24 sps:$4 sm:$0xff]   ;;  %v1748_v40 = vld [vmem:[%s2161_s2 + $0xc] ss:$24 sps:$4 sm:$0xff]  }
 0x10c   :  { %v784_v42 = vmax.f32 %v779_v41, 0.0  ;;  %v1749_v41 = vld [vmem:[%s2161_s2 + $0xa0] ss:$24 sps:$4 sm:$0xff]  }
 0x10e   :  { %v785_v43 = vpack.c.bf16 %v784_v42, %v784_v42  ;;  %v1750_v42 = vld [vmem:[%s2161_s2 + $0x70] ss:$24 sps:$4 sm:$0xff]  }
 0x110   :  { %1595 = vmatmul.mubr.msk.bf16.vlgmr.msra.gmra.mxu0 %vm816_vm1, %v785_v43  ;;  %v1442_v43 = vld [vmem:[%s2162_s3 + $0x5] ss:$0 sm:$0xff] }
 0x111   :  { %1620 = vmatprep.mubr.msk.bf16.mxu0 %vm1776_vm0, %v1775_v12  ;;  %1613 = vmatpush3.bf16.msra.mxu0 %v1741_v9  ;;  %v1755_v9 = vld [vmem:[%s2161_s2 + $0x44] ss:$24 sps:$4 sm:$0xff]  }
 0x112   :  { %1614 = vmatprep.subr.bf16.mxu0 %v1775_v12 }
 0x115   :  { %1615 = vmatpush3.bf16.msra.mxu0 %v1742_v10  ;;  %v1756_v10 = vld [vmem:[%s2161_s2 + $0x14] ss:$24 sps:$4 sm:$0xff]  }
 0x116   :  { %1616 = vmatprep.subr.bf16.mxu0 %v1775_v12 }
 0x119   :  { %1617 = vmatpush3.bf16.msra.mxu0 %v1743_v11  ;;  %v1455_v11 = vld [vmem:[%s2162_s3 + $0x7] ss:$0 sm:$0xff] }
 0x11a   :  { %1618 = vmatprep.subr.bf16.mxu0 %v1775_v12 }
 0x11d   :  { %1619 = vmatpush3.bf16.msra.mxu0 %v1744_v13 }
 0x11e   :  { %1636 = vmatprep.subr.bf16.mxu0 %v1775_v12 }
 0x1d0   :  { %v854_v45 = vpop.f32.mrf.mxu0 }
 0x1d1   :  { %v855_v46 = vadd.f32 %v1427_v44, %v854_v45 }
 0x1d2   :  { %v1596_v47 = vpop.f32.mrf.mxu0 }
 0x1d3   :  { %v861_v48 = vsel %vm860_vm2, %v855_v46, 0.0  ;;  %v864_v49 = vmul.f32 %v855_v46, %v855_v46 }
 0x1d4   :  { %862 = vadd.xlane.f32.xlu0 %v861_v48  ;;  %v857_v50 = vpop.f32.mrf.mxu0 }
 0x1d5   :  { %v865_v52 = vsel %vm860_vm2, %v864_v49, 0.0 }
 0x1d6   :  { %v1597_v51 = vpop.f32.mrf.mxu0 }
 0x1d8   :  { %866 = vadd.xlane.f32.xlu0 %v865_v52 }
 0x25d   :  { %v863_v55 = vpop.xlane.xlu0 %862 }
 0x25e   :  { %v868_v56 = vmul.f32 0.03125, %v863_v55 }
 0x260   :  { %v870_v58 = vmul.f32 %v868_v56, %v868_v56  ;;  %v872_v62 = vsub.f32 %v855_v46, %v868_v56 }
 0x261   :  { %v867_v57 = vpop.xlane.xlu0 %866 }
 0x262   :  { %v869_v59 = vmul.f32 0.03125, %v867_v57 }
 0x264   :  { %v871_v60 = vsub.f32 %v869_v59, %v870_v58 }
 0x266   :  { %v873_v61 = vadd.f32 1e-05, %v871_v60 }
 0x268   :  { %1757 = vrsqrt.f32 %v873_v61  ;;  %v1751_v61 = vld [vmem:[%s2161_s2 + $0x40] ss:$24 sps:$4 sm:$0xff]  }
 0x275   :  { %v1758_v63 = vpop.eup %1757 }
 0x276   :  { %v875_v1 = vmul.f32 %v1758_v63, %v872_v62  ;;  %v1752_v62 = vld [vmem:[%s2161_s2 + $0x10] ss:$24 sps:$4 sm:$0xff]   ;;  %v1449_v63 = vld [vmem:[%s2162_s3 + $0x6] ss:$0 sm:$0xff] }
 0x278   :  { %v882_v3 = vmul.f32 %v1433_v0, %v875_v1 }
 0x27a   :  { %v889_v4 = vadd.f32 %v1434_v2, %v882_v3 }
 0x27c   :  { %v890_v5 = vmax.f32 %v889_v4, 0.0 }
 0x27e   :  { %v891_v7 = vpack.c.bf16 %v890_v5, %v890_v5 }
 0x280   :  { %1603 = vmatmul.mubr.msk.bf16.vlgmr.msra.gmra.mxu1 %vm860_vm2, %v891_v7  ;;  %v1753_v7 = vld [vmem:[%s2161_s2 + $0xa4] ss:$24 sps:$4 sm:$0xff]  }
 0x281   :  { %1607 = vmatpush3.bf16.msra.mxu1 %v1740_v6  ;;  %1608 = vmatprep.mubr.msk.bf16.mxu1 %vm1776_vm0, %v1775_v12 }
 0x282   :  { %1624 = vmatprep.subr.bf16.mxu1 %v1775_v12 }
 0x288   :  { %1609 = vmatmul.mubr.msk.bf16.vlgmr.msra.gmra.mxu1 %vm953_vm3, %v77_v8  ;;  %v1754_v8 = vld [vmem:[%s2161_s2 + $0x74] ss:$24 sps:$4 sm:$0xff]  }
 0x289   :  { %1632 = vmatprep.mubr.msk.bf16.mxu1 %vm1776_vm0, %v1775_v12  ;;  %1625 = vmatpush3.bf16.msra.mxu1 %v1745_v37 }
 0x28a   :  { %1626 = vmatprep.subr.bf16.mxu1 %v1775_v12 }
 0x28d   :  { %1627 = vmatpush3.bf16.msra.mxu1 %v1746_v38 }
 0x28e   :  { %1628 = vmatprep.subr.bf16.mxu1 %v1775_v12 }
 0x291   :  { %1629 = vmatpush3.bf16.msra.mxu1 %v1747_v39 }
 0x292   :  { %1630 = vmatprep.subr.bf16.mxu1 %v1775_v12 }
 0x295   :  { %1631 = vmatpush3.bf16.msra.mxu1 %v1748_v40 }
 0x296   :  { %1648 = vmatprep.subr.bf16.mxu1 %v1775_v12 }
 0x340   :  { %v941_v14 = vpop.f32.mrf.mxu1 }
 0x342   :  { %v1604_v15 = vpop.f32.mrf.mxu1 }
 0x344   :  { %v944_v16 = vpop.f32.mrf.mxu1 }
 0x346   :  { %v1605_v17 = vpop.f32.mrf.mxu1 }
 0x348   :  { %v991_v19 = vpop.f32.mrf.mxu1 }
 0x349   :  { %v992_v20 = vadd.f32 %v991_v19, %v941_v14 }
 0x34a   :  { %v1610_v21 = vpop.f32.mrf.mxu1 }
 0x34b   :  { %v2084_v22 = vadd.f32 %v1440_v18, %v992_v20 }
 0x34c   :  { %v994_v23 = vpop.f32.mrf.mxu1 }
 0x34d   :  { %v1004_v24 = vmin.f32 %v2084_v22, 20.0  ;;  %vm1009_vm4 = vcmp.gt.f32.partialorder %v2084_v22, 20.0 }
 0x34e   :  { %v1611_v25 = vpop.f32.mrf.mxu1 }
 0x34f   :  { %v1005_v26 = vmul.f32 1.442695, %v1004_v24 }
 0x351   :  { %1759 = vpow2.f32 %v1005_v26 }
 0x35e   :  { %v1760_v27 = vpop.eup %1759 }
 0x35f   :  { %v1007_v28 = vadd.f32 1.0, %v1760_v27 }
 0x361   :  { %v1008_v29 = vmul.f32 %v1007_v28, %v1007_v28 }
 0x363   :  { %v1011_v30 = vadd.f32 1.0, %v1008_v29  ;;  %v1441_v31 = vadd.f32 -1.0, %v1008_v29  ;;  %v1462_v29 = vld [vmem:[%s2162_s3 + $0x8] ss:$0 sm:$0xff] }
 0x365   :  { %1761 = vrcp.f32 %v1011_v30 }
 0x372   :  { %v1762_v32 = vpop.eup %1761 }
 0x373   :  { %v1013_v33 = vmul.f32 %v1762_v32, %v1441_v31 }
 0x375   :  { %v1014_v34 = vsel %vm1009_vm4, 1.0, %v1013_v33 }
 0x376   :  { %v1015_v35 = vmul.f32 %v1014_v34, %v2084_v22 }
 0x378   :  { %v1016_v36 = vpack.c.bf16 %v1015_v35, %v1015_v35 }
 0x37a   :  { %1621 = vmatmul.mubr.msk.bf16.vlgmr.msra.gmra.mxu0 %vm816_vm1, %v1016_v36 }
 0x37b   :  { %1644 = vmatprep.mubr.msk.bf16.mxu0 %vm1776_vm0, %v1775_v12  ;;  %1637 = vmatpush3.bf16.msra.mxu0 %v1749_v41  ;;  %v1341_v41 = vlaneseq }
 0x37c   :  { %1638 = vmatprep.subr.bf16.mxu0 %v1775_v12 }
 0x37f   :  { %1639 = vmatpush3.bf16.msra.mxu0 %v1750_v42  ;;  %v1342_v42 = vand.u32 127, %v1341_v41 }
 0x380   :  { %1640 = vmatprep.subr.bf16.mxu0 %v1775_v12 }
 0x381   :  { %vm1343_vm7 = vcmp.lt.s32.totalorder %v1342_v42, 7 }
 0x383   :  { %1641 = vmatpush3.bf16.msra.mxu0 %v1751_v61 }
 0x384   :  { %1642 = vmatprep.subr.bf16.mxu0 %v1775_v12 }
 0x387   :  { %1643 = vmatpush3.bf16.msra.mxu0 %v1752_v62 }
 0x43a   :  { %v1084_v44 = vpop.f32.mrf.mxu0 }
 0x43b   :  { %v1085_v45 = vadd.f32 %v1442_v43, %v1084_v44 }
 0x43c   :  { %v1622_v46 = vpop.f32.mrf.mxu0 }
 0x43d   :  { %v1090_v47 = vmin.f32 %v1085_v45, 20.0  ;;  %vm1095_vm5 = vcmp.gt.f32.partialorder %v1085_v45, 20.0 }
 0x43e   :  { %v1087_v48 = vpop.f32.mrf.mxu0 }
 0x43f   :  { %v1091_v49 = vmul.f32 1.442695, %v1090_v47 }
 0x440   :  { %v1623_v50 = vpop.f32.mrf.mxu0 }
 0x441   :  { %1763 = vpow2.f32 %v1091_v49 }
 0x44e   :  { %v1764_v51 = vpop.eup %1763 }
 0x44f   :  { %v1093_v52 = vadd.f32 1.0, %v1764_v51 }
 0x451   :  { %v1094_v53 = vmul.f32 %v1093_v52, %v1093_v52 }
 0x453   :  { %v1097_v54 = vadd.f32 1.0, %v1094_v53  ;;  %v1448_v55 = vadd.f32 -1.0, %v1094_v53 }
 0x455   :  { %1765 = vrcp.f32 %v1097_v54 }
 0x462   :  { %v1766_v56 = vpop.eup %1765 }
 0x463   :  { %v1099_v57 = vmul.f32 %v1766_v56, %v1448_v55 }
 0x465   :  { %v1100_v58 = vsel %vm1095_vm5, 1.0, %v1099_v57 }
 0x466   :  { %v1101_v59 = vmul.f32 %v1100_v58, %v1085_v45 }
 0x468   :  { %v1102_v60 = vpack.c.bf16 %v1101_v59, %v1101_v59 }
 0x46a   :  { %1633 = vmatmul.mubr.msk.bf16.vlgmr.msra.gmra.mxu1 %vm816_vm1, %v1102_v60 }
 0x46b   :  { %1656 = vmatprep.mubr.msk.bf16.mxu1 %vm1776_vm0, %v1775_v12  ;;  %1649 = vmatpush3.bf16.msra.mxu1 %v1753_v7 }
 0x46c   :  { %1650 = vmatprep.subr.bf16.mxu1 %v1775_v12 }
 0x46f   :  { %1651 = vmatpush3.bf16.msra.mxu1 %v1754_v8 }
 0x470   :  { %1652 = vmatprep.subr.bf16.mxu1 %v1775_v12 }
 0x473   :  { %1653 = vmatpush3.bf16.msra.mxu1 %v1755_v9 }
 0x474   :  { %1654 = vmatprep.subr.bf16.mxu1 %v1775_v12 }
 0x477   :  { %1655 = vmatpush3.bf16.msra.mxu1 %v1756_v10 }
 0x52a   :  { %v1170_v0 = vpop.f32.mrf.mxu1 }
 0x52b   :  { %v1171_v1 = vadd.f32 %v1449_v63, %v1170_v0 }
 0x52c   :  { %v1634_v2 = vpop.f32.mrf.mxu1 }
 0x52d   :  { %v1176_v3 = vadd.f32 %v1171_v1, %v2084_v22 }
 0x52e   :  { %v1173_v4 = vpop.f32.mrf.mxu1 }
 0x52f   :  { %v1177_v5 = vpack.c.bf16 %v1176_v3, %v1176_v3 }
 0x530   :  { %v1635_v6 = vpop.f32.mrf.mxu1 }
 0x531   :  { %1645 = vmatmul.mubr.msk.bf16.vlgmr.msra.gmra.mxu0 %vm816_vm1, %v1177_v5 }
 0x5f1   :  { %v1245_v13 = vpop.f32.mrf.mxu0 }
 0x5f2   :  { %v1246_v14 = vadd.f32 %v1455_v11, %v1245_v13 }
 0x5f3   :  { %v1646_v15 = vpop.f32.mrf.mxu0 }
 0x5f4   :  { %v1251_v16 = vmin.f32 %v1246_v14, 20.0  ;;  %vm1256_vm6 = vcmp.gt.f32.partialorder %v1246_v14, 20.0 }
 0x5f5   :  { %v1248_v17 = vpop.f32.mrf.mxu0 }
 0x5f6   :  { %v1252_v18 = vmul.f32 1.442695, %v1251_v16 }
 0x5f7   :  { %v1647_v19 = vpop.f32.mrf.mxu0 }
 0x5f8   :  { %1767 = vpow2.f32 %v1252_v18 }
 0x605   :  { %v1768_v20 = vpop.eup %1767 }
 0x606   :  { %v1254_v21 = vadd.f32 1.0, %v1768_v20 }
 0x608   :  { %v1255_v12 = vmul.f32 %v1254_v21, %v1254_v21 }
 0x60a   :  { %v1258_v22 = vadd.f32 1.0, %v1255_v12  ;;  %v1461_v23 = vadd.f32 -1.0, %v1255_v12 }
 0x60c   :  { %1769 = vrcp.f32 %v1258_v22 }
 0x619   :  { %v1770_v24 = vpop.eup %1769 }
 0x61a   :  { %v1260_v25 = vmul.f32 %v1770_v24, %v1461_v23 }
 0x61c   :  { %v1261_v26 = vsel %vm1256_vm6, 1.0, %v1260_v25 }
 0x61d   :  { %v1262_v27 = vmul.f32 %v1261_v26, %v1246_v14 }
 0x61f   :  { %v1263_v28 = vpack.c.bf16 %v1262_v27, %v1262_v27 }
 0x621   :  { %1657 = vmatmul.mubr.msk.bf16.vlgmr.msra.gmra.mxu1 %vm816_vm1, %v1263_v28 }
 0x6e1   :  { %v1331_v30 = vpop.f32.mrf.mxu1 }
 0x6e2   :  { %v1332_v31 = vadd.f32 %v1462_v29, %v1331_v30 }
 0x6e3   :  { %v1658_v32 = vpop.f32.mrf.mxu1 }
 0x6e4   :  { %1771 = vtanh.f32 %v1332_v31 }
 0x6e5   :  { %v1334_v33 = vpop.f32.mrf.mxu1 }
 0x6e7   :  { %v1659_v34 = vpop.f32.mrf.mxu1 }
 0x6f1   :  { %v1772_v35 = vpop.eup %1771 }
 0x6f2   :  { %v1338_v36 = vadd.f32 1.0, %v1772_v35 }
 0x6f4   :  { %v1339_v37 = vmul.f32 4.6051702, %v1338_v36 }
 0x6f6   :  { %v1340_v38 = vadd.f32 -9.2103405, %v1339_v37 }
 0x6f8   :  { %v1344_v39 = vmul.f32 0.5, %v1340_v38 }
 0x6fa   :  { %v1345_v40 = vmul.f32 1.442695, %v1344_v39 }
 0x6fc   :  { %1773 = vpow2.f32 %v1345_v40 }
 0x709   :  { %v1774_v43 = vpop.eup %1773 }
 0x70a   :  { %v1347_v44 = vsel %vm1343_vm7, %v1772_v35, %v1774_v43 }
 0x70b   :  { %1349 = vst.msk [vmem:[%s2163_s4] sm:$0xff] %vm1348_vm8, %v1347_v44 }

</bundles_post_ra>
